<compile_context>
chip_gen: v7x
topology: tpu7x:2x2x1
jax: 0.10.0
libtpu: 0.0.40
codegen_flags: <defaults>
</compile_context>

<pallas_src>
import functools

import jax
import jax.numpy as jnp
from jax.experimental import pallas as pl
from jax.experimental.pallas import tpu as pltpu

LANES = 128
SUBLANES = 8
MAX_BLOCK_ROWS = 2048  # 2048 x 128 x 4B = 1 MiB per input per pipeline buffer


def _mask_l1_partials_kernel(pred_ref, gt_ref, mask_ref, num_ref, den_ref,
                             *, block_rows, valid_rows, needs_tail_mask):
    # Cast in-kernel (free: VPU slot has huge slack in a memory-bound kernel).
    p = pred_ref[...].astype(jnp.float32)
    g = gt_ref[...].astype(jnp.float32)
    m = mask_ref[...].astype(jnp.float32)

    num = jnp.abs(p - g) * m
    den = m

    if needs_tail_mask:
        # Last tile may extend past the real data: zero out-of-range rows.
        i = pl.program_id(0)
        row_ids = jax.lax.broadcasted_iota(jnp.int32, (block_rows, LANES), 0)
        valid = (i * block_rows + row_ids) < valid_rows
        num = jnp.where(valid, num, 0.0)
        den = jnp.where(valid, den, 0.0)

    # Fold (block_rows, 128) -> (8, 128) with pure VPU vector adds (layout-aligned
    # with the (8,128) vreg tiling); the expensive cross-lane reduce happens once,
    # outside the kernel, on the tiny partials array.
    num_ref[...] = num.reshape(block_rows // SUBLANES, SUBLANES, LANES).sum(axis=0)[None]
    den_ref[...] = den.reshape(block_rows // SUBLANES, SUBLANES, LANES).sum(axis=0)[None]


def mask_l1_loss(pred, gt, mask, eps=1e-6):
    """Masked L1 loss, returns a float32 scalar."""
    if mask.shape != pred.shape:
        # TODO(synk): for broadcastable masks (e.g. (N,1,H,W)) a mask-reusing
        # BlockSpec index_map would avoid materializing the C-x-larger mask in HBM.
        mask = jnp.broadcast_to(mask, pred.shape)

    total = int(pred.size)
    if total == 0:
        return jnp.float32(0.0)

    # Flatten in the ORIGINAL dtype (no wrapper-side f32 materialization).
    pred_f = pred.reshape(-1)
    gt_f = gt.reshape(-1)
    mask_f = mask.reshape(-1)

    # Minimal pad to the (8, 128) 2-D granularity; only taken for awkward sizes.
    chunk = SUBLANES * LANES  # 1024
    padded_total = pl.cdiv(total, chunk) * chunk
    pad = padded_total - total
    if pad:
        pred_f = jnp.pad(pred_f, (0, pad))
        gt_f = jnp.pad(gt_f, (0, pad))
        mask_f = jnp.pad(mask_f, (0, pad))  # zero mask => padded elems contribute 0

    rows = padded_total // LANES            # multiple of 8
    block_rows = min(MAX_BLOCK_ROWS, rows)  # multiple of 8
    n_tiles = pl.cdiv(rows, block_rows)
    needs_tail_mask = (n_tiles * block_rows) != rows

    pred2 = pred_f.reshape(rows, LANES)
    gt2 = gt_f.reshape(rows, LANES)
    mask2 = mask_f.reshape(rows, LANES)

    kernel = functools.partial(
        _mask_l1_partials_kernel,
        block_rows=block_rows,
        valid_rows=rows,
        needs_tail_mask=needs_tail_mask,
    )

    in_spec = pl.BlockSpec((block_rows, LANES), lambda i: (i, 0))
    out_spec = pl.BlockSpec((1, SUBLANES, LANES), lambda i: (i, 0, 0))

    num_part, den_part = pl.pallas_call(
        kernel,
        out_shape=(
            jax.ShapeDtypeStruct((n_tiles, SUBLANES, LANES), jnp.float32),
            jax.ShapeDtypeStruct((n_tiles, SUBLANES, LANES), jnp.float32),
        ),
        grid_spec=pltpu.PrefetchScalarGridSpec(
            num_scalar_prefetch=0,
            grid=(n_tiles,),
            in_specs=[in_spec, in_spec, in_spec],
            out_specs=[out_spec, out_spec],
        ),
        compiler_params=pltpu.CompilerParams(
            # Each tile writes its own output block: the axis is independent and
            # can be sharded across TensorCores (v7x megacore).
            dimension_semantics=("parallel",),
        ),
    )(pred2, gt2, mask2)

    num = jnp.sum(num_part)
    den = jnp.sum(den_part)
    return num / (den + jnp.float32(eps))


def _reference(pred, gt, mask, eps=1e-6):
    mask = jnp.broadcast_to(mask, pred.shape).astype(jnp.float32)
    num = jnp.sum(jnp.abs(pred.astype(jnp.float32) - gt.astype(jnp.float32)) * mask)
    den = jnp.sum(mask) + eps
    return num / den


if __name__ == "__main__":
    key = jax.random.PRNGKey(0)
    k1, k2, k3 = jax.random.split(key, 3)

    # NCHW shapes consistent with the module's typical usage.
    pred = jax.random.normal(k1, (2, 4, 16, 16), dtype=jnp.float32)
    gt = jax.random.normal(k2, (2, 4, 16, 16), dtype=jnp.float32)
    mask = (jax.random.uniform(k3, (2, 4, 16, 16)) > 0.5).astype(jnp.float32)

    loss = jax.block_until_ready(mask_l1_loss(pred, gt, mask))
    ref = jax.block_until_ready(_reference(pred, gt, mask))

    assert jnp.allclose(loss, ref, rtol=1e-5, atol=1e-6), (loss, ref)
    print("KERNEL_OK")
</pallas_src>

<mosaic_0001>
module attributes {stable_mosaic.version = 11 : i64} {
  func.func @_mask_l1_partials_kernel(%arg0: i32, %arg1: memref<16x128xf32, #tpu.memory_space<vmem>>, %arg2: memref<16x128xf32, #tpu.memory_space<vmem>>, %arg3: memref<16x128xf32, #tpu.memory_space<vmem>>, %arg4: memref<1x8x128xf32, #tpu.memory_space<vmem>>, %arg5: memref<1x8x128xf32, #tpu.memory_space<vmem>>) attributes {dimension_semantics = [#tpu.dimension_semantics<parallel>], iteration_bounds = array<i64: 1>, scalar_prefetch = 0 : i64, scratch_operands = 0 : i64, tpu.core_type = #tpu.core_type<tc>, window_params = [{transform_indices = @transform_0, window_bounds = array<i64: 16, 128>}, {transform_indices = @transform_1, window_bounds = array<i64: 16, 128>}, {transform_indices = @transform_2, window_bounds = array<i64: 16, 128>}, {transform_indices = @transform_3, window_bounds = array<i64: 1, 8, 128>}, {transform_indices = @transform_4, window_bounds = array<i64: 1, 8, 128>}]} {
    %c0 = arith.constant 0 : index
    %c0_0 = arith.constant 0 : index
    %0 = vector.load %arg1[%c0, %c0_0] : memref<16x128xf32, #tpu.memory_space<vmem>>, vector<16x128xf32>
    %c0_1 = arith.constant 0 : index
    %c0_2 = arith.constant 0 : index
    %1 = vector.load %arg2[%c0_1, %c0_2] : memref<16x128xf32, #tpu.memory_space<vmem>>, vector<16x128xf32>
    %c0_3 = arith.constant 0 : index
    %c0_4 = arith.constant 0 : index
    %2 = vector.load %arg3[%c0_3, %c0_4] : memref<16x128xf32, #tpu.memory_space<vmem>>, vector<16x128xf32>
    %3 = arith.subf %0, %1 : vector<16x128xf32>
    %4 = math.absf %3 : vector<16x128xf32>
    %5 = arith.mulf %4, %2 : vector<16x128xf32>
    %6 = vector.shape_cast %5 : vector<16x128xf32> to vector<2x8x128xf32>
    %cst = arith.constant dense<0.000000e+00> : vector<8x128xf32>
    %7 = vector.multi_reduction <add>, %6, %cst [0] : vector<2x8x128xf32> to vector<8x128xf32>
    %8 = vector.shape_cast %7 : vector<8x128xf32> to vector<1x8x128xf32>
    %c0_5 = arith.constant 0 : index
    %c0_6 = arith.constant 0 : index
    %c0_7 = arith.constant 0 : index
    %9 = vector.load %arg4[%c0_5, %c0_6, %c0_7] : memref<1x8x128xf32, #tpu.memory_space<vmem>>, vector<1x8x128xf32>
    tpu.vector_store %arg4[%c0_5, %c0_6, %c0_7], %8 {strides = array<i32>} : memref<1x8x128xf32, #tpu.memory_space<vmem>>, vector<1x8x128xf32>,
    %10 = vector.shape_cast %2 : vector<16x128xf32> to vector<2x8x128xf32>
    %cst_8 = arith.constant dense<0.000000e+00> : vector<8x128xf32>
    %11 = vector.multi_reduction <add>, %10, %cst_8 [0] : vector<2x8x128xf32> to vector<8x128xf32>
    %12 = vector.shape_cast %11 : vector<8x128xf32> to vector<1x8x128xf32>
    %c0_9 = arith.constant 0 : index
    %c0_10 = arith.constant 0 : index
    %c0_11 = arith.constant 0 : index
    %13 = vector.load %arg5[%c0_9, %c0_10, %c0_11] : memref<1x8x128xf32, #tpu.memory_space<vmem>>, vector<1x8x128xf32>
    tpu.vector_store %arg5[%c0_9, %c0_10, %c0_11], %12 {strides = array<i32>} : memref<1x8x128xf32, #tpu.memory_space<vmem>>, vector<1x8x128xf32>,
    return
  }
  func.func @transform_0(%arg0: i32) -> (i32, i32) {
    %c0_i32 = arith.constant 0 : i32
    %c0_i32_0 = arith.constant 0 : i32
    return %arg0, %c0_i32 : i32, i32
  }
  func.func @transform_1(%arg0: i32) -> (i32, i32) {
    %c0_i32 = arith.constant 0 : i32
    %c0_i32_0 = arith.constant 0 : i32
    return %arg0, %c0_i32 : i32, i32
  }
  func.func @transform_2(%arg0: i32) -> (i32, i32) {
    %c0_i32 = arith.constant 0 : i32
    %c0_i32_0 = arith.constant 0 : i32
    return %arg0, %c0_i32 : i32, i32
  }
  func.func @transform_3(%arg0: i32) -> (i32, i32, i32) {
    %c0_i32 = arith.constant 0 : i32
    %c0_i32_0 = arith.constant 0 : i32
    %c0_i32_1 = arith.constant 0 : i32
    return %arg0, %c0_i32, %c0_i32_0 : i32, i32, i32
  }
  func.func @transform_4(%arg0: i32) -> (i32, i32, i32) {
    %c0_i32 = arith.constant 0 : i32
    %c0_i32_0 = arith.constant 0 : i32
    %c0_i32_1 = arith.constant 0 : i32
    return %arg0, %c0_i32, %c0_i32_0 : i32, i32, i32
  }
}

</mosaic_0001>

<bundles_post_ra>
// kernel: tpu_custom_call.1
= control target key start
LH: loop header
LB: loop body
LE: loop exit
PB: predicated region body
PF: predicated region fallthrough
CT: control target
= control target key end

     0   :  { %10 = vsyncpa [#allocation3], 0  ;;  %s338_s0 = inlined_call_operand.hbm [shape: f32[16,128], index: 0, kind: input, shape index: {}]   ;;  %s339_s1 = inlined_call_operand.hbm [shape: f32[16,128], index: 1, kind: input, shape index: {}]   ;;  %s340_s2 = inlined_call_operand.hbm [shape: f32[16,128], index: 2, kind: input, shape index: {}]   ;;  %s341_s3 = inlined_call_operand.hbm [shape: f32[1,8,128], index: 3, kind: output, shape index: {0}]   ;;  %s342_s4 = inlined_call_operand.hbm [shape: f32[1,8,128], index: 4, kind: output, shape index: {1}]  }
   0x1   :  { %11 = vsyncpa [#allocation6], 0 }
   0x2   :  { %12 = vsyncpa [#allocation4], 0 }
   0x3   :  { %13 = vsyncpa [#allocation10], 0  ;;  %s230_s15 = smov [#allocation5]   ;;  %s231_s17 = smov [#allocation2]  }
   0x4   :  { %s31_s16 = sshll.u32 %s230_s15, 4  ;;  %s19_s18 = sshll.u32 %s231_s17, 4  ;;  %s32_s16 = int_to_ptr.vmem [resolvable:$true] %s31_s16  ;;  %s262_s18 = int_to_ptr.vmem [resolvable:$true] %s19_s18 }
   0x5   :  { %s112_s21 = scalar_lea.hbm %s339_s1, 256 }
   0x6   :  { %p113_p0 = scmp.ne.s32.totalorder %s339_s1, %s112_s21  ;;  %p116_p1 = scmp.lt.u32.totalorder %s112_s21, %s339_s1 }
   0x8   :  { %p118_p2 = pnand %p116_p1, %p113_p0 }
   0xa   :  { %121 = shalt.err (!%p118_p2)
}
   0xb   :  { %s122_s26 = scalar_lea.vmem %s32_s16, 256  ;;  %p127_p4 = scmp.lt.s32.totalorder %s32_s16, %s32_s16 }
   0xc   :  { %p123_p3 = scmp.ne.s32.totalorder %s32_s16, %s122_s26  ;;  %p128_p5 = scmp.lt.s32.totalorder %s122_s26, %s122_s26 }
   0xe   :  { %p129_p6 = por %p128_p5, %p127_p4 }
  0x10   :  { %p130_p7 = pnand %p129_p6, %p123_p3 }
  0x12   :  { %133 = shalt.err (!%p130_p7)
}
  0x13   :  { %s232_s27 = smov 128   ;;  %s233_s28 = smov 8  }
  0x14   :  { %37 = dma.hbm_to_vmem [thread:$0]  %s339_s1, 256, %s32_s16, [#allocation6], %s232_s27, %s232_s27, %s233_s28  }
  0x15   :  { %s134_s7 = scalar_lea.hbm %s338_s0, 256 }
  0x16   :  { %p135_p8 = scmp.ne.s32.totalorder %s338_s0, %s134_s7  ;;  %p138_p9 = scmp.lt.u32.totalorder %s134_s7, %s338_s0 }
  0x18   :  { %p140_p10 = pnand %p138_p9, %p135_p8 }
  0x1a   :  { %143 = shalt.err (!%p140_p10)
}
  0x1b   :  { %s144_s12 = scalar_lea.vmem %s262_s18, 256  ;;  %p149_p12 = scmp.lt.s32.totalorder %s262_s18, %s262_s18 }
  0x1c   :  { %p145_p11 = scmp.ne.s32.totalorder %s262_s18, %s144_s12  ;;  %p150_p13 = scmp.lt.s32.totalorder %s144_s12, %s144_s12 }
  0x1e   :  { %p151_p0 = por %p150_p13, %p149_p12 }
  0x20   :  { %p152_p1 = pnand %p151_p0, %p145_p11 }
  0x22   :  { %155 = shalt.err (!%p152_p1)
}
  0x23   :  { %25 = dma.hbm_to_vmem [thread:$0]  %s338_s0, 256, %s262_s18, [#allocation3], %s232_s27, %s232_s27, %s233_s28  }
  0x24   :  { %s234_s14 = smov [#allocation7]   ;;  %s156_s19 = scalar_lea.hbm %s340_s2, 256 }
  0x25   :  { %s43_s15 = sshll.u32 %s234_s14, 4  ;;  %p157_p2 = scmp.ne.s32.totalorder %s340_s2, %s156_s19  ;;  %s44_s15 = int_to_ptr.vmem [resolvable:$true] %s43_s15 }
  0x26   :  { %p160_p3 = scmp.lt.u32.totalorder %s156_s19, %s340_s2 }
  0x28   :  { %p162_p4 = pnand %p160_p3, %p157_p2 }
  0x2a   :  { %165 = shalt.err (!%p162_p4)
}
  0x2b   :  { %s166_s24 = scalar_lea.vmem %s44_s15, 256  ;;  %p171_p6 = scmp.lt.s32.totalorder %s44_s15, %s44_s15 }
  0x2c   :  { %p167_p5 = scmp.ne.s32.totalorder %s44_s15, %s166_s24  ;;  %p172_p7 = scmp.lt.s32.totalorder %s166_s24, %s166_s24 }
  0x2e   :  { %p173_p8 = por %p172_p7, %p171_p6 }
  0x30   :  { %p174_p9 = pnand %p173_p8, %p167_p5 }
  0x32   :  { %177 = shalt.err (!%p174_p9)
}
  0x33   :  { %49 = dma.hbm_to_vmem [thread:$0]  %s340_s2, 256, %s44_s15, [#allocation6], %s232_s27, %s232_s27, %s233_s28  }
  0x34   :  { %222 = dma.done.wait [#allocation3], 256  }
  0x35   :  { %223 = vsyncadd [#allocation3], 4294967040 }
  0x36   :  { %224 = dma.done.wait [#allocation6], 512  }
  0x37   :  { %225 = vsyncadd [#allocation6], 4294966784  ;;  %s235_s25 = smov [#allocation9]   ;;  %v59_v0 = vld [vmem:[#allocation2] sm:$0xff]  ;;  %v60_v1 = vld [vmem:[#allocation2 + $0x8] sm:$0xff]  ;;  %s236_s2 = smov [#allocation8]  }
  0x38   :  { %s91_s26 = sshll.u32 %s235_s25, 4  ;;  %v61_v2 = vld [vmem:[#allocation5] sm:$0xff]  ;;  %v62_v3 = vld [vmem:[#allocation5 + $0x8] sm:$0xff]  ;;  %v63_v4 = vld [vmem:[#allocation7] sm:$0xff]  ;;  %s81_s27 = sshll.u32 %s236_s2, 4  ;;  %s92_s26 = int_to_ptr.vmem [resolvable:$true] %s91_s26  ;;  %s82_s27 = int_to_ptr.vmem [resolvable:$true] %s81_s27 }
  0x39   :  { %v64_v5 = vld [vmem:[#allocation7 + $0x8] sm:$0xff]  ;;  %v65_v6 = vsub.f32 %v59_v0, %v61_v2  ;;  %v66_v7 = vsub.f32 %v60_v1, %v62_v3  ;;  %s178_s28 = scalar_lea.vmem %s92_s26, 128  ;;  %p183_p11 = scmp.lt.s32.totalorder %s92_s26, %s92_s26 }
  0x3a   :  { %v73_v8 = vadd.f32 %v64_v5, %v63_v4  ;;  %p179_p10 = scmp.ne.s32.totalorder %s92_s26, %s178_s28  ;;  %p184_p12 = scmp.lt.s32.totalorder %s178_s28, %s178_s28 }
  0x3b   :  { %v67_v9 = vand.u32 2147483647, %v65_v6  ;;  %v68_v10 = vand.u32 2147483647, %v66_v7 }
  0x3c   :  { %74 = vst [vmem:[#allocation9] sm:$0xff] %v73_v8  ;;  %p185_p13 = por %p184_p12, %p183_p11 }
  0x3d   :  { %v69_v11 = vmul.f32 %v67_v9, %v63_v4 }
  0x3e   :  { %p186_p0 = pnand %p185_p13, %p179_p10 }
  0x40   :  { %189 = shalt.err (!%p186_p0)
}
  0x41   :  { %s190_s5 = scalar_lea.hbm %s342_s4, 128 }
  0x42   :  { %p191_p1 = scmp.ne.s32.totalorder %s342_s4, %s190_s5  ;;  %p194_p2 = scmp.lt.u32.totalorder %s190_s5, %s342_s4 }
  0x44   :  { %p196_p3 = pnand %p194_p2, %p191_p1 }
  0x46   :  { %199 = shalt.err (!%p196_p3)
}
  0x47   :  { %94 = dma.vmem_to_hbm [thread:$0]  %s92_s26, 128, %s342_s4, [#allocation10]   ;;  %v70_v12 = vmul.f32 %v68_v10, %v64_v5 }
  0x48   :  { %s200_s12 = scalar_lea.vmem %s82_s27, 128  ;;  %p205_p5 = scmp.lt.s32.totalorder %s82_s27, %s82_s27 }
  0x49   :  { %v71_v13 = vadd.f32 %v70_v12, %v69_v11  ;;  %p201_p4 = scmp.ne.s32.totalorder %s82_s27, %s200_s12  ;;  %p206_p6 = scmp.lt.s32.totalorder %s200_s12, %s200_s12 }
  0x4b   :  { %72 = vst [vmem:[#allocation8] sm:$0xff] %v71_v13  ;;  %p207_p7 = por %p206_p6, %p205_p5 }
  0x4d   :  { %p208_p8 = pnand %p207_p7, %p201_p4 }
  0x4f   :  { %211 = shalt.err (!%p208_p8)
}
  0x50   :  { %s212_s14 = scalar_lea.hbm %s341_s3, 128 }
  0x51   :  { %p213_p9 = scmp.ne.s32.totalorder %s341_s3, %s212_s14  ;;  %p216_p10 = scmp.lt.u32.totalorder %s212_s14, %s341_s3 }
  0x53   :  { %p218_p11 = pnand %p216_p10, %p213_p9 }
  0x55   :  { %221 = shalt.err (!%p218_p11)
}
  0x56   :  { %84 = dma.vmem_to_hbm [thread:$0]  %s82_s27, 128, %s341_s3, [#allocation4]  }
  0x57   :  { %226 = dma.done.wait [#allocation4], 128  }
  0x58   :  { %227 = vsyncadd [#allocation4], 4294967168 }
  0x59   :  { %228 = dma.done.wait [#allocation10], 128  }
  0x5a   :  { %229 = vsyncadd [#allocation10], 4294967168 }
  0x5b   :  { %101 = vsyncpa [#allocation3], 1 }
  0x5c   :  { %102 = vsyncpa [#allocation6], 1 }
  0x5d   :  { %103 = vsyncpa [#allocation4], 1 }
  0x5e   :  { %104 = vsyncpa [#allocation10], 1 }

</bundles_post_ra>
